<compile_context>
chip_gen: v7x
topology: tpu7x:2x2x1
jax: 0.10.0
libtpu: 0.0.40
codegen_flags: <defaults>
</compile_context>

<pallas_src>
import functools

import jax
import jax.numpy as jnp
from jax.experimental import pallas as pl
from jax.experimental.pallas import tpu as pltpu


def _round_up(x, m):
    return (x + m - 1) // m * m


def _vmem_budget_bytes():
    """~3/4 of per-core VMEM (falls back to a v7x-safe 64 MiB if the query fails)."""
    cap = 64 * 1024 * 1024
    try:
        info = pltpu.get_tpu_info()
        cap = int(getattr(info, "vmem_capacity_bytes", cap))
    except Exception:
        pass
    return (3 * cap) // 4


def _pick_tile_t(T, B, kC, C_pad, d_pad, vmem_budget, weight_bytes):
    """Largest T-tile (multiple of 8, <= 2048) whose pipelined blocks fit the VMEM budget."""
    t_full = _round_up(max(T, 1), 8)
    cap = 2048
    if B == 1 and t_full >= 16:
        # Make sure there are >= 2 parallel tiles so both v7x TensorCores get work.
        cap = min(cap, max(8, _round_up(t_full // 2, 8)))
    # Bytes held in VMEM per T-row: double-buffered x_unf (bf16), x_res (f32), out (f32),
    # plus slack for the f32 accumulators / sigmoid temporaries.
    per_row = 2 * (kC * 2) + 2 * (C_pad * 4) + 2 * (d_pad * 4) + 4 * (d_pad * 4)
    fixed = 2 * weight_bytes + (1 << 20)  # weights (double-buffered) + slack
    tT = (vmem_budget - fixed) // per_row
    tT = (tT // 8) * 8
    tT = max(8, min(t_full, cap, tT))
    return int(tT)


def _gated_conv_kernel(xu_ref, xr_ref, w_ref, b_ref, out_ref):
    # xu_ref : (1, tT, k*C_pad)  bf16  im2col'd input window (taps folded into contraction)
    # xr_ref : (1, tT, C_pad)    f32   original x (residual), lane-padded
    # w_ref  : (2, k*C_pad, d_pad) bf16  [0]=value-half weights, [1]=gate-half weights
    # b_ref  : (2, 1, d_pad)     f32   [0]=value bias, [1]=gate bias
    # out_ref: (1, tT, d_pad)
    xu = xu_ref[0]                                             # (tT, k*C_pad)
    # Two lane-dense GLU halves, f32 accumulation on the MXU.
    a = jnp.dot(xu, w_ref[0], preferred_element_type=jnp.float32) + b_ref[0]
    g = jnp.dot(xu, w_ref[1], preferred_element_type=jnp.float32) + b_ref[1]
    out_ref[0] = (a * jax.nn.sigmoid(g) + xr_ref[0]).astype(out_ref.dtype)


def gated_conv_block(x_btc, weight_oik, bias, *, k, delta, causal=False):
    """x_btc: (B, T, C) float32.  weight_oik: (2d, d, k) PyTorch-layout effective weight."""
    B, T, C = x_btc.shape
    d = C
    assert weight_oik.shape == (2 * d, d, k)
    halo = (k - 1) * delta
    p_left = halo if causal else halo // 2

    C_pad = _round_up(C, 128)                       # lane-dense channels
    d_pad = C_pad                                   # each GLU half, lane-dense
    kC = k * C_pad

    # Effective weights -> (2, k*C_pad, d_pad): halves split, taps folded, lane-padded.
    w = weight_oik.reshape(2, d, d, k)              # (half, out, in, tap)
    w = jnp.transpose(w, (0, 3, 2, 1))              # (half, tap, in, out)
    w = jnp.pad(w, ((0, 0), (0, 0), (0, C_pad - d), (0, d_pad - d)))
    wf = w.reshape(2, kC, d_pad).astype(jnp.bfloat16)
    b2 = jnp.pad(bias.reshape(2, 1, d),
                 ((0, 0), (0, 0), (0, d_pad - d))).astype(jnp.float32)

    # Chip-aware T tile + explicit scoped-VMEM limit.
    budget = _vmem_budget_bytes()
    tT = _pick_tile_t(T, B, kC, C_pad, d_pad, budget,
                      int(wf.size) * wf.dtype.itemsize)
    nT = -(-T // tT)
    Tt = nT * tT

    # Layout plumbing in XLA: channel pad, conv pad, im2col over taps (bf16 for the MXU),
    # and a separate f32 residual stream (no offset slice needed in the kernel).
    xc = jnp.pad(x_btc, ((0, 0), (0, 0), (0, C_pad - C)))            # (B, T, C_pad)
    Lp = Tt + halo
    xp = jnp.pad(xc, ((0, 0), (p_left, Lp - p_left - T), (0, 0)))    # (B, Lp, C_pad)
    x_unf = jnp.concatenate(
        [xp[:, j * delta:j * delta + Tt, :] for j in range(k)],
        axis=-1).astype(jnp.bfloat16)                                # (B, Tt, k*C_pad)
    x_res = jnp.pad(xc, ((0, 0), (0, Tt - T), (0, 0)))               # (B, Tt, C_pad) f32

    out = pl.pallas_call(
        _gated_conv_kernel,
        out_shape=jax.ShapeDtypeStruct((B, Tt, d_pad), x_btc.dtype),
        grid_spec=pltpu.PrefetchScalarGridSpec(
            num_scalar_prefetch=0,
            grid=(B, nT),
            in_specs=[
                pl.BlockSpec((1, tT, kC), lambda b, t: (b, t, 0)),
                pl.BlockSpec((1, tT, C_pad), lambda b, t: (b, t, 0)),
                pl.BlockSpec((2, kC, d_pad), lambda b, t: (0, 0, 0)),   # constant -> no re-DMA
                pl.BlockSpec((2, 1, d_pad), lambda b, t: (0, 0, 0)),
            ],
            out_specs=pl.BlockSpec((1, tT, d_pad), lambda b, t: (b, t, 0)),
        ),
        compiler_params=pltpu.CompilerParams(
            dimension_semantics=("parallel", "parallel"),
            vmem_limit_bytes=int(budget),
        ),
    )(x_unf, x_res, wf, b2)

    return out[:, :T, :d]


def _reference(x_btc, weight_oik, bias, *, k, delta, causal=False):
    """Pure-JAX (f32) reference matching PyTorch Conv1d + GLU + residual semantics."""
    B, T, C = x_btc.shape
    d = C
    x_nct = jnp.transpose(x_btc, (0, 2, 1))               # (B, C, T) PyTorch layout
    p = (k - 1) * delta if causal else (k - 1) * delta // 2
    y = jax.lax.conv_general_dilated(
        x_nct, weight_oik, window_strides=(1,), padding=[(p, p)],
        rhs_dilation=(delta,), dimension_numbers=("NCH", "OIH", "NCH"))
    y = y + bias[None, :, None]
    if causal and p > 0:
        y = y[:, :, :-p]
    a, g = y[:, :d, :], y[:, d:, :]
    out = a * jax.nn.sigmoid(g) + x_nct
    return jnp.transpose(out, (0, 2, 1))                  # back to (B, T, C)


if __name__ == "__main__":
    # Module hyperparameters: GatedConvBlock(d=4, k=3, delta=2, causal=False, normalization='weight')
    B, T, d, k, delta = 2, 16, 4, 3, 2
    causal = False

    key = jax.random.PRNGKey(0)
    kx, kv, kg, kb = jax.random.split(key, 4)

    # Input (PyTorch shape (B, C, T) conceptually; built channels-last here).
    x_btc = jax.random.normal(kx, (B, T, d), dtype=jnp.float32)

    # Deterministic weight-norm parameters: v (2d, d, k), g (2d,), bias (2d,)
    v = 0.3 * jax.random.normal(kv, (2 * d, d, k), dtype=jnp.float32)
    g = 0.5 + jax.random.uniform(kg, (2 * d,), dtype=jnp.float32)
    bias = 0.1 * jax.random.normal(kb, (2 * d,), dtype=jnp.float32)

    # Effective weight-normalized conv weight (PyTorch weight_norm, dim=0).
    v_norm = jnp.sqrt(jnp.sum(v * v, axis=(1, 2), keepdims=True))
    weight_oik = g[:, None, None] * v / v_norm             # (2d, d, k)

    fn = jax.jit(functools.partial(gated_conv_block, k=k, delta=delta, causal=causal))
    out = jax.block_until_ready(fn(x_btc, weight_oik, bias))

    ref = _reference(x_btc, weight_oik, bias, k=k, delta=delta, causal=causal)
    assert out.shape == (B, T, d)
    max_diff = float(jnp.max(jnp.abs(out - ref)))
    # bf16 MXU operands with f32 accumulation -> relaxed tolerance vs the f32 reference.
    assert max_diff < 3e-2, f"max abs diff = {max_diff}"

    print("KERNEL_OK")
</pallas_src>

<mosaic_0001>
module attributes {stable_mosaic.version = 11 : i64} {
  func.func @_gated_conv_kernel(%arg0: i32, %arg1: i32, %arg2: memref<1x16x384xbf16, #tpu.memory_space<vmem>>, %arg3: memref<1x16x128xf32, #tpu.memory_space<vmem>>, %arg4: memref<2x384x128xbf16, #tpu.memory_space<vmem>>, %arg5: memref<2x1x128xf32, #tpu.memory_space<vmem>>, %arg6: memref<1x16x128xf32, #tpu.memory_space<vmem>>) attributes {dimension_semantics = [#tpu.dimension_semantics<parallel>, #tpu.dimension_semantics<parallel>], iteration_bounds = array<i64: 2, 1>, scalar_prefetch = 0 : i64, scratch_operands = 0 : i64, tpu.core_type = #tpu.core_type<tc>, window_params = [{transform_indices = @transform_0, window_bounds = array<i64: 1, 16, 384>}, {transform_indices = @transform_1, window_bounds = array<i64: 1, 16, 128>}, {pipeline_mode = #tpu.pipeline_mode<synchronous>, transform_indices = @transform_2, window_bounds = array<i64: 2, 384, 128>}, {pipeline_mode = #tpu.pipeline_mode<synchronous>, transform_indices = @transform_3, window_bounds = array<i64: 2, 1, 128>}, {transform_indices = @transform_4, window_bounds = array<i64: 1, 16, 128>}]} {
    %c0 = arith.constant 0 : index
    %c0_0 = arith.constant 0 : index
    %c0_1 = arith.constant 0 : index
    %0 = vector.load %arg2[%c0, %c0_0, %c0_1] : memref<1x16x384xbf16, #tpu.memory_space<vmem>>, vector<1x16x384xbf16>
    %1 = vector.shape_cast %0 : vector<1x16x384xbf16> to vector<16x384xbf16>
    %c0_2 = arith.constant 0 : index
    %c0_3 = arith.constant 0 : index
    %c0_4 = arith.constant 0 : index
    %2 = vector.load %arg4[%c0_2, %c0_3, %c0_4] : memref<2x384x128xbf16, #tpu.memory_space<vmem>>, vector<1x384x128xbf16>
    %3 = vector.shape_cast %2 : vector<1x384x128xbf16> to vector<384x128xbf16>
    %cst = arith.constant dense<0.000000e+00> : vector<16x128xf32>
    %4 = tpu.matmul %1, %3, %cst {dimension_numbers = #tpu.dot_dimension_numbers<[1], [0], [0], [1], [0, 0, 1, 1], [], []>} : vector<16x384xbf16>, vector<384x128xbf16>, vector<16x128xf32> -> vector<16x128xf32>
    %c0_5 = arith.constant 0 : index
    %c0_6 = arith.constant 0 : index
    %c0_7 = arith.constant 0 : index
    %5 = vector.load %arg5[%c0_5, %c0_6, %c0_7] : memref<2x1x128xf32, #tpu.memory_space<vmem>>, vector<1x1x128xf32>
    %6 = vector.shape_cast %5 : vector<1x1x128xf32> to vector<1x128xf32>
    %7 = vector.broadcast %6 : vector<1x128xf32> to vector<16x128xf32>
    %8 = arith.addf %4, %7 : vector<16x128xf32>
    %c1 = arith.constant 1 : index
    %c0_8 = arith.constant 0 : index
    %c0_9 = arith.constant 0 : index
    %9 = vector.load %arg4[%c1, %c0_8, %c0_9] : memref<2x384x128xbf16, #tpu.memory_space<vmem>>, vector<1x384x128xbf16>
    %10 = vector.shape_cast %9 : vector<1x384x128xbf16> to vector<384x128xbf16>
    %cst_10 = arith.constant dense<0.000000e+00> : vector<16x128xf32>
    %11 = tpu.matmul %1, %10, %cst_10 {dimension_numbers = #tpu.dot_dimension_numbers<[1], [0], [0], [1], [0, 0, 1, 1], [], []>} : vector<16x384xbf16>, vector<384x128xbf16>, vector<16x128xf32> -> vector<16x128xf32>
    %c1_11 = arith.constant 1 : index
    %c0_12 = arith.constant 0 : index
    %c0_13 = arith.constant 0 : index
    %12 = vector.load %arg5[%c1_11, %c0_12, %c0_13] : memref<2x1x128xf32, #tpu.memory_space<vmem>>, vector<1x1x128xf32>
    %13 = vector.shape_cast %12 : vector<1x1x128xf32> to vector<1x128xf32>
    %14 = vector.broadcast %13 : vector<1x128xf32> to vector<16x128xf32>
    %15 = arith.addf %11, %14 : vector<16x128xf32>
    %16 = arith.negf %15 : vector<16x128xf32>
    %17 = math.exp %16 : vector<16x128xf32>
    %cst_14 = arith.constant 1.000000e+00 : f32
    %18 = vector.broadcast %cst_14 : f32 to vector<16x128xf32>
    %19 = arith.addf %18, %17 : vector<16x128xf32>
    %20 = arith.divf %18, %19 : vector<16x128xf32>
    %21 = arith.mulf %8, %20 : vector<16x128xf32>
    %c0_15 = arith.constant 0 : index
    %c0_16 = arith.constant 0 : index
    %c0_17 = arith.constant 0 : index
    %22 = vector.load %arg3[%c0_15, %c0_16, %c0_17] : memref<1x16x128xf32, #tpu.memory_space<vmem>>, vector<1x16x128xf32>
    %23 = vector.shape_cast %22 : vector<1x16x128xf32> to vector<16x128xf32>
    %24 = arith.addf %21, %23 : vector<16x128xf32>
    %c0_18 = arith.constant 0 : index
    %c0_19 = arith.constant 0 : index
    %c0_20 = arith.constant 0 : index
    %25 = vector.load %arg6[%c0_18, %c0_19, %c0_20] : memref<1x16x128xf32, #tpu.memory_space<vmem>>, vector<1x16x128xf32>
    %26 = vector.shape_cast %25 : vector<1x16x128xf32> to vector<16x128xf32>
    %27 = vector.shape_cast %24 : vector<16x128xf32> to vector<1x16x128xf32>
    tpu.vector_store %arg6[%c0_18, %c0_19, %c0_20], %27 {strides = array<i32>} : memref<1x16x128xf32, #tpu.memory_space<vmem>>, vector<1x16x128xf32>,
    return
  }
  func.func @transform_0(%arg0: i32, %arg1: i32) -> (i32, i32, i32) {
    %c0_i32 = arith.constant 0 : i32
    %c0_i32_0 = arith.constant 0 : i32
    return %arg0, %arg1, %c0_i32 : i32, i32, i32
  }
  func.func @transform_1(%arg0: i32, %arg1: i32) -> (i32, i32, i32) {
    %c0_i32 = arith.constant 0 : i32
    %c0_i32_0 = arith.constant 0 : i32
    return %arg0, %arg1, %c0_i32 : i32, i32, i32
  }
  func.func @transform_2(%arg0: i32, %arg1: i32) -> (i32, i32, i32) {
    %c0_i32 = arith.constant 0 : i32
    %c0_i32_0 = arith.constant 0 : i32
    %c0_i32_1 = arith.constant 0 : i32
    %c0_i32_2 = arith.constant 0 : i32
    return %c0_i32, %c0_i32_0, %c0_i32_1 : i32, i32, i32
  }
  func.func @transform_3(%arg0: i32, %arg1: i32) -> (i32, i32, i32) {
    %c0_i32 = arith.constant 0 : i32
    %c0_i32_0 = arith.constant 0 : i32
    %c0_i32_1 = arith.constant 0 : i32
    %c0_i32_2 = arith.constant 0 : i32
    return %c0_i32, %c0_i32_0, %c0_i32_1 : i32, i32, i32
  }
  func.func @transform_4(%arg0: i32, %arg1: i32) -> (i32, i32, i32) {
    %c0_i32 = arith.constant 0 : i32
    %c0_i32_0 = arith.constant 0 : i32
    return %arg0, %arg1, %c0_i32 : i32, i32, i32
  }
}

</mosaic_0001>

<bundles_post_ra>
// kernel: gated_conv_block.1
= control target key start
LH: loop header
LB: loop body
LE: loop exit
PB: predicated region body
PF: predicated region fallthrough
CT: control target
= control target key end

     0   :  { %s1347_s15 = smov 0   ;;  %s1349_s16 = smov 0   ;;  %s1565_s0 = inlined_call_operand.vmem [shape: bf16[2,16,384], index: 0, kind: input, shape index: {}]   ;;  %s1566_s1 = inlined_call_operand.vmem [shape: f32[2,16,128], index: 1, kind: input, shape index: {}]   ;;  %s1567_s2 = inlined_call_operand.vmem [shape: bf16[2,384,128], index: 2, kind: input, shape index: {}]   ;;  %s1568_s3 = inlined_call_operand.vmem [shape: f32[2,1,128], index: 3, kind: input, shape index: {}]   ;;  %s1569_s4 = inlined_call_operand.vmem [shape: f32[2,16,128], index: 4, kind: output, shape index: {}]  }
   0x1   :  { %s1351_s17 = smov 0  }
   0x2 LB: > { %s26_s18 = sadd.s32 1, %s1314_s16  ;;  %p993_p0 = scmp.ge.s32.totalorder %s1318_s17, 1  ;;  %s1318_s17 = sphi %s1351_s17, %s14_s17   ;;  %s1314_s16 = sphi %s1349_s16, %s1571_s16   ;;  %s1310_s15 = sphi %s1347_s15, %s1570_s15  }
   0x3   : > { %p28_p1 = scmp.ge.s32.totalorder %s26_s18, 2  ;;  %p201_p2 = scmp.lt.s32.totalorder %s1318_s17, 3 }
   0x5   : > { %s1573_s18 = smov (%p28_p1, %s26_s18), 0  ;;  %p202_p3 = pnand %p993_p0, %p201_p2 }
   0x6   : > { %v1236_v0 = vld [vmem:[%s1567_s2 + $0x40] sm:$0xff] (!%p202_p3)   ;;  %v1320_v2 = vmov (!%p202_p3), 0.0   ;;  %v1239_v4 = vld [vmem:[%s1567_s2 + $0x48] sm:$0xff] (!%p202_p3)   ;;  %vm1321_vm0 = vmmov (!%p202_p3), 0   ;;  %v1242_v7 = vld [vmem:[%s1567_s2 + $0x50] sm:$0xff] (!%p202_p3)   ;;  %p246_p4 = scmp.lt.s32.totalorder (!%p202_p3), %s1310_s15, 1 }
   0x7   : > { %205 = sbr.rel (%p202_p3) target bundleno = 323 (0x143), region = 36  ;;  %v1237_v1 = vld [vmem:[%s1567_s2] sm:$0xff] (!%p202_p3)   ;;  %1169 = vmatprep.subr.bf16.mxu1 (!%p202_p3), %v1320_v2  ;;  %1107 = vmatprep.subr.bf16.mxu0 (!%p202_p3), %v1236_v0  ;;  %v1240_v5 = vld [vmem:[%s1567_s2 + $0x8] sm:$0xff] (!%p202_p3)   ;;  %v1243_v8 = vld [vmem:[%s1567_s2 + $0x10] sm:$0xff] (!%p202_p3)  }
   0x8   : > { %v1238_v3 = vld [vmem:[%s1567_s2 + $0x80] sm:$0xff] (!%p202_p3)   ;;  %1108 = vmatpush3.bf16.msra.mxu0 (!%p202_p3), %v1237_v1  ;;  %1185 = vmatprep.mubr.msk.bf16.mxu1 (!%p202_p3), %vm1321_vm0, %v1320_v2  ;;  %v1241_v6 = vld [vmem:[%s1567_s2 + $0x88] sm:$0xff] (!%p202_p3)   ;;  %v1244_v9 = vld [vmem:[%s1567_s2 + $0x90] sm:$0xff] (!%p202_p3)  }
   0x9   : > { %1170 = vmatpush3.bf16.msra.mxu1 (!%p202_p3), %v1238_v3  ;;  %1109 = vmatprep.subr.bf16.mxu0 (!%p202_p3), %v1239_v4  ;;  %v1245_v10 = vld [vmem:[%s1567_s2 + $0x58] sm:$0xff] (!%p202_p3)   ;;  %v1248_v13 = vld [vmem:[%s1567_s2 + $0x60] sm:$0xff] (!%p202_p3)   ;;  %v1251_v16 = vld [vmem:[%s1567_s2 + $0x68] sm:$0xff] (!%p202_p3)  }
   0xa   : > { %1171 = vmatprep.subr.bf16.mxu1 (!%p202_p3), %v1320_v2  ;;  %v1246_v11 = vld [vmem:[%s1567_s2 + $0x18] sm:$0xff] (!%p202_p3)   ;;  %v1249_v14 = vld [vmem:[%s1567_s2 + $0x20] sm:$0xff] (!%p202_p3)   ;;  %v1252_v17 = vld [vmem:[%s1567_s2 + $0x28] sm:$0xff] (!%p202_p3)  }
   0xb   : > { %v1247_v12 = vld [vmem:[%s1567_s2 + $0x98] sm:$0xff] (!%p202_p3)   ;;  %v1250_v15 = vld [vmem:[%s1567_s2 + $0xa0] sm:$0xff] (!%p202_p3)   ;;  %v1253_v18 = vld [vmem:[%s1567_s2 + $0xa8] sm:$0xff] (!%p202_p3)  }
   0xc   : > { %1110 = vmatpush3.bf16.msra.mxu0 (!%p202_p3), %v1240_v5  ;;  %v1254_v19 = vld [vmem:[%s1567_s2 + $0x70] sm:$0xff] (!%p202_p3)   ;;  %v1257_v22 = vld [vmem:[%s1567_s2 + $0x78] sm:$0xff] (!%p202_p3)   ;;  %v1263_v27 = vld [vmem:[%s1567_s2 + $0x100] sm:$0xff] (!%p202_p3)  }
   0xd   : > { %1172 = vmatpush3.bf16.msra.mxu1 (!%p202_p3), %v1241_v6  ;;  %1111 = vmatprep.subr.bf16.mxu0 (!%p202_p3), %v1242_v7  ;;  %v1255_v20 = vld [vmem:[%s1567_s2 + $0x30] sm:$0xff] (!%p202_p3)   ;;  %v1258_v24 = vld [vmem:[%s1567_s2 + $0x38] sm:$0xff] (!%p202_p3)   ;;  %v1264_v28 = vld [vmem:[%s1567_s2 + $0xc0] sm:$0xff] (!%p202_p3)  }
   0xe   : > { %1173 = vmatprep.subr.bf16.mxu1 %v1320_v2  ;;  %s1575_s15 = smov (!%p246_p4, %s1310_s15), 1  ;;  %v1256_v21 = vld [vmem:[%s1567_s2 + $0xb0] sm:$0xff]   ;;  %v1262_v25 = vld [vmem:[%s1567_s2 + $0xb8] sm:$0xff]   ;;  %v1266_v30 = vld [vmem:[%s1567_s2 + $0x140] sm:$0xff]  }
   0xf   : > { %s1209_s29 = smul.u32 24, %s1575_s15  ;;  %v1267_v31 = vld [vmem:[%s1567_s2 + $0x108] sm:$0xff]   ;;  %v1270_v34 = vld [vmem:[%s1567_s2 + $0x110] sm:$0xff]   ;;  %v1273_v37 = vld [vmem:[%s1567_s2 + $0x118] sm:$0xff]   ;;  %s1105_s9 = sshll.u32 %s1575_s15, 4 }
  0x10   : > { %1112 = vmatpush3.bf16.msra.mxu0 %v1243_v8  ;;  %v1268_v32 = vld [vmem:[%s1567_s2 + $0xc8] sm:$0xff]   ;;  %v1271_v35 = vld [vmem:[%s1567_s2 + $0xd0] sm:$0xff]   ;;  %v1274_v38 = vld [vmem:[%s1567_s2 + $0xd8] sm:$0xff]   ;;  %s274_s19 = scalar_lea.vmem %s1569_s4, %s1105_s9 }
  0x11   : > { %1174 = vmatpush3.bf16.msra.mxu1 %v1244_v9  ;;  %1113 = vmatprep.subr.bf16.mxu0 %v1245_v10  ;;  %s254_s12 = scalar_lea.vmem %s1565_s0, %s1209_s29  ;;  %v1269_v33 = vld [vmem:[%s1567_s2 + $0x148] sm:$0xff]   ;;  %v1272_v36 = vld [vmem:[%s1567_s2 + $0x150] sm:$0xff]   ;;  %v1275_v39 = vld [vmem:[%s1567_s2 + $0x158] sm:$0xff]  }
  0x12   : > { %1175 = vmatprep.subr.bf16.mxu1 %v1320_v2  ;;  %v1261_v23 = vld [vmem:[%s254_s12 + $0x4] ss:$12 sps:$4 sm:$0xff]   ;;  %v1456_v26 = vld [vmem:[%s254_s12] ss:$12 sps:$4 sm:$0xff]   ;;  %v1265_v29 = vld [vmem:[%s254_s12 + $0x8] ss:$12 sps:$4 sm:$0xff]   ;;  %s264_s12 = scalar_lea.vmem %s1566_s1, %s1105_s9 }
  0x13   : > { %528 = vmatprep.mubr.bf16.mxu0 %v1261_v23  ;;  %v1276_v40 = vld [vmem:[%s1567_s2 + $0x120] sm:$0xff]   ;;  %v1279_v43 = vld [vmem:[%s1567_s2 + $0x128] sm:$0xff]   ;;  %v1282_v46 = vld [vmem:[%s1567_s2 + $0x130] sm:$0xff]  }
  0x14   : > { %1114 = vmatpush3.bf16.msra.mxu0 %v1246_v11  ;;  %v1277_v41 = vld [vmem:[%s1567_s2 + $0xe0] sm:$0xff]   ;;  %v1280_v44 = vld [vmem:[%s1567_s2 + $0xe8] sm:$0xff]   ;;  %v1283_v47 = vld [vmem:[%s1567_s2 + $0xf0] sm:$0xff]  }
  0x15   : > { %1176 = vmatpush3.bf16.msra.mxu1 %v1247_v12  ;;  %1115 = vmatprep.subr.bf16.mxu0 %v1248_v13  ;;  %v1278_v42 = vld [vmem:[%s1567_s2 + $0x160] sm:$0xff]   ;;  %v1281_v45 = vld [vmem:[%s1567_s2 + $0x168] sm:$0xff]   ;;  %v1284_v48 = vld [vmem:[%s1567_s2 + $0x170] sm:$0xff]  }
  0x16   : > { %1177 = vmatprep.subr.bf16.mxu1 %v1320_v2  ;;  %v1285_v49 = vld [vmem:[%s1567_s2 + $0x138] sm:$0xff]   ;;  %v999_v54 = vld [vmem:[%s1568_s3] ss:$0 sm:$0xff]  ;;  %v1076_v5 = vld [vmem:[%s1568_s3 + $0x1] ss:$0 sm:$0xff] }
  0x17   : > { %v1286_v50 = vld [vmem:[%s1567_s2 + $0xf8] sm:$0xff]  }
  0x18   : > { %1116 = vmatpush3.bf16.msra.mxu0 %v1249_v14  ;;  %v1287_v51 = vld [vmem:[%s1567_s2 + $0x178] sm:$0xff]  }
  0x19   : > { %1178 = vmatpush3.bf16.msra.mxu1 %v1250_v15  ;;  %1117 = vmatprep.subr.bf16.mxu0 %v1251_v16 }
  0x1a   : > { %1179 = vmatprep.subr.bf16.mxu1 %v1320_v2 }
  0x1c   : > { %1118 = vmatpush3.bf16.msra.mxu0 %v1252_v17 }
  0x1d   : > { %1180 = vmatpush3.bf16.msra.mxu1 %v1253_v18  ;;  %1119 = vmatprep.subr.bf16.mxu0 %v1254_v19 }
  0x1e   : > { %1181 = vmatprep.subr.bf16.mxu1 %v1320_v2 }
  0x20   : > { %1120 = vmatpush3.bf16.msra.mxu0 %v1255_v20 }
  0x21   : > { %1182 = vmatpush3.bf16.msra.mxu1 %v1256_v21  ;;  %1121 = vmatprep.subr.bf16.mxu0 %v1257_v22 }
  0x22   : > { %1183 = vmatprep.subr.bf16.mxu1 %v1320_v2 }
  0x24   : > { %1122 = vmatpush3.bf16.msra.mxu0 %v1258_v24 }
  0x25   : > { %1184 = vmatpush3.bf16.msra.mxu1 %v1262_v25  ;;  %1138 = vmatprep.subr.bf16.mxu0 %v1263_v27  ;;  %v875_v25 = vld [vmem:[%s264_s12] sm:$0xff] }
  0x26   : > { %1189 = vmatprep.subr.bf16.mxu1 %v1320_v2 }
  0x27   : > { %529 = vmatmul.mubr.bf16.vlgmr.msra.gmra.mrb[0].mxu0 %v1456_v26 }
  0x28   : > { %1139 = vmatpush3.bf16.msra.mxu0 %v1264_v28  ;;  %1186 = vmatmul.mubr.bf16.vlgmr.msra.gmra.mrb[0].mxu1 %v1265_v29  ;;  %v876_v28 = vld [vmem:[%s264_s12 + $0x8] sm:$0xff] }
  0x29   : > { %1190 = vmatpush3.bf16.msra.mxu1 %v1266_v30  ;;  %1140 = vmatprep.subr.bf16.mxu0 %v1267_v31 }
  0x2a   : > { %1191 = vmatprep.subr.bf16.mxu1 %v1320_v2  ;;  %811 = vmatprep.mubr.bf16.mxu0 %v1261_v23 }
  0x2b   : > { %1205 = vmatprep.mubr.msk.bf16.mxu1 %vm1321_vm0, %v1320_v2 }
  0x2c   : > { %1141 = vmatpush3.bf16.msra.mxu0 %v1268_v32 }
  0x2d   : > { %1192 = vmatpush3.bf16.msra.mxu1 %v1269_v33  ;;  %1142 = vmatprep.subr.bf16.mxu0 %v1270_v34 }
  0x2e   : > { %1193 = vmatprep.subr.bf16.mxu1 %v1320_v2 }
  0x30   : > { %1143 = vmatpush3.bf16.msra.mxu0 %v1271_v35 }
  0x31   : > { %1194 = vmatpush3.bf16.msra.mxu1 %v1272_v36  ;;  %1144 = vmatprep.subr.bf16.mxu0 %v1273_v37 }
  0x32   : > { %1195 = vmatprep.subr.bf16.mxu1 %v1320_v2 }
  0x34   : > { %1145 = vmatpush3.bf16.msra.mxu0 %v1274_v38 }
  0x35   : > { %1196 = vmatpush3.bf16.msra.mxu1 %v1275_v39  ;;  %1146 = vmatprep.subr.bf16.mxu0 %v1276_v40 }
  0x36   : > { %1197 = vmatprep.subr.bf16.mxu1 %v1320_v2 }
  0x38   : > { %1147 = vmatpush3.bf16.msra.mxu0 %v1277_v41 }
  0x39   : > { %1198 = vmatpush3.bf16.msra.mxu1 %v1278_v42  ;;  %1148 = vmatprep.subr.bf16.mxu0 %v1279_v43 }
  0x3a   : > { %1199 = vmatprep.subr.bf16.mxu1 %v1320_v2 }
  0x3c   : > { %1149 = vmatpush3.bf16.msra.mxu0 %v1280_v44 }
  0x3d   : > { %1200 = vmatpush3.bf16.msra.mxu1 %v1281_v45  ;;  %1150 = vmatprep.subr.bf16.mxu0 %v1282_v46 }
  0x3e   : > { %1201 = vmatprep.subr.bf16.mxu1 %v1320_v2 }
  0x40   : > { %1151 = vmatpush3.bf16.msra.mxu0 %v1283_v47 }
  0x41   : > { %1202 = vmatpush3.bf16.msra.mxu1 %v1284_v48  ;;  %1152 = vmatprep.subr.bf16.mxu0 %v1285_v49 }
  0x42   : > { %1203 = vmatprep.subr.bf16.mxu1 %v1320_v2 }
  0x44   : > { %1153 = vmatpush3.bf16.msra.mxu0 %v1286_v50 }
  0x45   : > { %1204 = vmatpush3.bf16.msra.mxu1 %v1287_v51 }
  0x47   : > { %812 = vmatmul.mubr.bf16.vlgmr.msra.gmra.mrb[4].mxu0 %v1456_v26 }
  0x48   : > { %1206 = vmatmul.mubr.bf16.vlgmr.msra.gmra.mrb[4].mxu1 %v1265_v29 }
  0xfa   : > { %v1123_v52 = vpop.f32.mrb[0].mxu0 }
  0xfb   : > { %v1124_v53 = vpop.f32.mrb[1].mxu0  ;;  %v571_v55 = vpop.f32.mrb[0].mxu1 }
  0xfc   : > { %v1125_v56 = vadd.f32 %v1124_v53, %v1123_v52  ;;  %v1126_v57 = vpop.f32.mrb[2].mxu0  ;;  %v1187_v58 = vpop.f32.mrb[1].mxu1 }
  0xfd   : > { %v1127_v59 = vpop.f32.mrb[3].mxu0  ;;  %v574_v60 = vpop.f32.mrb[2].mxu1 }
  0xfe   : > { %v1128_v61 = vadd.f32 %v1127_v59, %v1126_v57  ;;  %v531_v62 = vadd.f32 %v1125_v56, %v999_v54  ;;  %v1188_v63 = vpop.f32.mrb[3].mxu1 }
 0x100   : > { %v572_v0 = vadd.f32 %v571_v55, %v531_v62  ;;  %v534_v1 = vadd.f32 %v1128_v61, %v999_v54 }
 0x102   : > { %v575_v2 = vadd.f32 %v574_v60, %v534_v1 }
 0x11a   : > { %v1154_v3 = vpop.f32.mrb[4].mxu0 }
 0x11b   : > { %v1155_v4 = vpop.f32.mrb[5].mxu0  ;;  %v854_v6 = vpop.f32.mrb[4].mxu1 }
 0x11c   : > { %v1156_v7 = vadd.f32 %v1155_v4, %v1154_v3  ;;  %v1157_v8 = vpop.f32.mrb[6].mxu0  ;;  %v1207_v9 = vpop.f32.mrb[5].mxu1 }
 0x11d   : > { %v1158_v10 = vpop.f32.mrb[7].mxu0  ;;  %v857_v11 = vpop.f32.mrb[6].mxu1 }
 0x11e   : > { %v814_v12 = vadd.f32 %v1156_v7, %v1076_v5  ;;  %v1159_v13 = vadd.f32 %v1158_v10, %v1157_v8  ;;  %v1208_v14 = vpop.f32.mrb[7].mxu1 }
 0x120   : > { %v855_v15 = vadd.f32 %v854_v6, %v814_v12  ;;  %v817_v16 = vadd.f32 %v1159_v13, %v1076_v5 }
 0x122   : > { %v1101_v17 = vmul.f32 -1.442695, %v855_v15  ;;  %v858_v18 = vadd.f32 %v857_v11, %v817_v16 }
 0x124   : > { %1288 = vpow2.f32 %v1101_v17  ;;  %v1102_v19 = vmul.f32 -1.442695, %v858_v18 }
 0x126   : > { %1290 = vpow2.f32 %v1102_v19 }
 0x12e   : > { %v1289_v20 = vpop.eup %1288 }
 0x12f   : > { %v867_v21 = vadd.f32 1.0, %v1289_v20 }
 0x130   : > { %v1291_v22 = vpop.eup %1290 }
 0x131   : > { %1292 = vrcp.f32 %v867_v21  ;;  %v868_v23 = vadd.f32 1.0, %v1291_v22 }
 0x133   : > { %1294 = vrcp.f32 %v868_v23 }
 0x13b   : > { %v1293_v24 = vpop.eup %1292 }
 0x13c   : > { %v873_v26 = vmul.f32 %v1293_v24, %v572_v0 }
 0x13d   : > { %v1295_v27 = vpop.eup %1294 }
 0x13e   : > { %v877_v29 = vadd.f32 %v875_v25, %v873_v26  ;;  %v874_v30 = vmul.f32 %v1295_v27, %v575_v2 }
 0x140   : > { %879 = vst [vmem:[%s274_s19] sm:$0xff] %v877_v29  ;;  %v878_v31 = vadd.f32 %v876_v28, %v874_v30 }
 0x142   : > { %880 = vst [vmem:[%s274_s19 + $0x8] sm:$0xff] %v878_v31 }
 0x143 PF: > { %s14_s17 = sadd.s32 1, %s1318_s17   ;;  %s1570_s15 = smov %s1314_s16 }
 0x144   : > { %p11_p5 = scmp.ge.s32.totalorder %s14_s17, 4   ;;  %s1571_s16 = smov %s1573_s18 }
 0x146   :  { %13 = sbr.rel (!%p11_p5) target bundleno = 2 (0x2), region = 71 }

</bundles_post_ra>
